<compile_context>
chip_gen: v7x
topology: tpu7x:2x2x1
jax: 0.10.0
libtpu: 0.0.40
codegen_flags: <defaults>
</compile_context>

<pallas_src>
import functools

import jax
import jax.numpy as jnp
from jax.experimental import pallas as pl
from jax.experimental.pallas import tpu as pltpu


def _round_up(x, m):
    return ((x + m - 1) // m) * m


def _choose_tb(B, tb_max):
    """Pick the batch tile: big enough to amortize per-step overhead, but with
    at least 2 grid steps (for B >= 16) so v7x's two TensorCores both get work."""
    if B >= 16:
        tb = min(tb_max, _round_up((B + 1) // 2, 8))
    else:
        tb = _round_up(max(B, 1), 8)
    return tb


def _dueling_net_kernel(
    x_ref,
    w1_ref, b1_ref,
    w2_ref, b2_ref,
    w3_ref, b3_ref,     # fused [adv | val | zero-pad(->8)] head
    out_ref,            # [tb, n_out] -- narrow, no lane padding
    *,
    n_out,
):
    x = x_ref[...]

    # h1 = relu(x @ W1 + b1)
    h1 = jnp.dot(x, w1_ref[...], preferred_element_type=jnp.float32) + b1_ref[...]
    h1 = jnp.maximum(h1, 0.0)

    # h2 = relu(h1 @ W2 + b2)
    h2 = jnp.dot(h1, w2_ref[...], preferred_element_type=jnp.float32) + b2_ref[...]
    h2 = jnp.maximum(h2, 0.0)

    # fused third layer: columns [0, n_out) = advantage, column n_out = value,
    # remaining columns zero-weight padding (ignored).
    y = jnp.dot(h2, w3_ref[...], preferred_element_type=jnp.float32) + b3_ref[...]

    adv = y[:, :n_out]
    val = y[:, n_out:n_out + 1]

    # dueling combine; mean as sum * compile-time constant (no runtime divide).
    adv_mean = jnp.sum(adv, axis=1, keepdims=True) * (1.0 / n_out)

    out_ref[...] = (val + adv - adv_mean).astype(out_ref.dtype)


def prepare_params(params):
    """One-time prep: fuse adv/val heads, pad head width to a multiple of 8.
    Call once at init; do NOT call per forward."""
    n_out = params["w3_adv"].shape[1]
    n_head = n_out + 1
    n_head_pad = _round_up(n_head, 8)
    w3 = jnp.concatenate([params["w3_adv"], params["w3_v"]], axis=1)   # [n_mid, n_out+1]
    b3 = jnp.concatenate([params["b3_adv"], params["b3_v"]], axis=1)   # [1,     n_out+1]
    w3 = jnp.pad(w3, ((0, 0), (0, n_head_pad - n_head)))
    b3 = jnp.pad(b3, ((0, 0), (0, n_head_pad - n_head)))
    return dict(
        w1=params["w1"], b1=params["b1"],
        w2=params["w2"], b2=params["b2"],
        w3=w3, b3=b3, n_out=n_out,
    )


def dueling_net_forward(x, prep, *, tb=8192):
    """x: [B, n_in] f32. prep: output of prepare_params (weights stored [in, out])."""
    B, n_in = x.shape
    n_out = prep["n_out"]

    tb_eff = _choose_tb(B, tb)
    grid = (pl.cdiv(B, tb_eff),)   # partial tail block handled (masked) by Pallas

    kernel = functools.partial(_dueling_net_kernel, n_out=n_out)

    def resident(a):
        # same block every grid step -> stays in VMEM, no re-DMA per step
        nd = a.ndim
        return pl.BlockSpec(a.shape, lambda i: (0,) * nd)

    out = pl.pallas_call(
        kernel,
        out_shape=jax.ShapeDtypeStruct((B, n_out), jnp.float32),
        grid=grid,
        in_specs=[
            pl.BlockSpec((tb_eff, n_in), lambda i: (i, 0)),    # x streamed over batch
            resident(prep["w1"]), resident(prep["b1"]),
            resident(prep["w2"]), resident(prep["b2"]),
            resident(prep["w3"]), resident(prep["b3"]),
        ],
        out_specs=pl.BlockSpec((tb_eff, n_out), lambda i: (i, 0)),
        compiler_params=pltpu.CompilerParams(
            dimension_semantics=("parallel",),
        ),
    )(x, prep["w1"], prep["b1"], prep["w2"], prep["b2"], prep["w3"], prep["b3"])

    return out


def init_params(key, n_in, n_mid, n_out):
    """Deterministic init mirroring nn.Linear shapes (stored transposed: [in, out])."""
    ks = jax.random.split(key, 8)

    def lin(kw, kb, fan_in, fan_out):
        bound = 1.0 / jnp.sqrt(fan_in)
        w = jax.random.uniform(kw, (fan_in, fan_out), jnp.float32, -bound, bound)
        b = jax.random.uniform(kb, (1, fan_out), jnp.float32, -bound, bound)
        return w, b

    w1, b1 = lin(ks[0], ks[1], n_in, n_mid)
    w2, b2 = lin(ks[2], ks[3], n_mid, n_mid)
    w3a, b3a = lin(ks[4], ks[5], n_mid, n_out)
    w3v, b3v = lin(ks[6], ks[7], n_mid, 1)
    return dict(w1=w1, b1=b1, w2=w2, b2=b2,
                w3_adv=w3a, b3_adv=b3a, w3_v=w3v, b3_v=b3v)


def reference_forward(x, p):
    h1 = jnp.maximum(x @ p["w1"] + p["b1"], 0.0)
    h2 = jnp.maximum(h1 @ p["w2"] + p["b2"], 0.0)
    adv = h2 @ p["w3_adv"] + p["b3_adv"]
    val = h2 @ p["w3_v"] + p["b3_v"]
    return val + adv - jnp.mean(adv, axis=1, keepdims=True)


if __name__ == "__main__":
    n_in, n_mid, n_out = 16, 32, 4
    key = jax.random.PRNGKey(0)
    kx, kp, kx2 = jax.random.split(key, 3)
    params = init_params(kp, n_in, n_mid, n_out)
    prep = prepare_params(params)   # one-time weight prep, out of the hot path

    # small batch (single grid step)
    B = 8
    x = jax.random.normal(kx, (B, n_in), jnp.float32)
    out = jax.block_until_ready(dueling_net_forward(x, prep))
    ref = reference_forward(x, params)
    assert out.shape == (B, n_out)
    assert jnp.allclose(out, ref, atol=1e-5, rtol=1e-5), "mismatch vs JAX reference (B=8)"

    # larger, non-multiple batch: exercises multi-step grid + masked partial tail block
    B2 = 200
    x2 = jax.random.normal(kx2, (B2, n_in), jnp.float32)
    out2 = jax.block_until_ready(dueling_net_forward(x2, prep, tb=64))
    ref2 = reference_forward(x2, params)
    assert out2.shape == (B2, n_out)
    assert jnp.allclose(out2, ref2, atol=1e-5, rtol=1e-5), "mismatch vs JAX reference (B=200)"

    # default (large) tile path
    out3 = jax.block_until_ready(dueling_net_forward(x2, prep))
    assert jnp.allclose(out3, ref2, atol=1e-5, rtol=1e-5), "mismatch vs JAX reference (default tb)"

    print("KERNEL_OK")
</pallas_src>

<mosaic_0001>
module attributes {stable_mosaic.version = 11 : i64} {
  func.func @_dueling_net_kernel(%arg0: i32, %arg1: memref<8x16xf32, #tpu.memory_space<vmem>>, %arg2: memref<16x32xf32, #tpu.memory_space<vmem>>, %arg3: memref<1x32xf32, #tpu.memory_space<vmem>>, %arg4: memref<32x32xf32, #tpu.memory_space<vmem>>, %arg5: memref<1x32xf32, #tpu.memory_space<vmem>>, %arg6: memref<32x8xf32, #tpu.memory_space<vmem>>, %arg7: memref<1x8xf32, #tpu.memory_space<vmem>>, %arg8: memref<8x4xf32, #tpu.memory_space<vmem>>) attributes {dimension_semantics = [#tpu.dimension_semantics<parallel>], iteration_bounds = array<i64: 1>, scalar_prefetch = 0 : i64, scratch_operands = 0 : i64, tpu.core_type = #tpu.core_type<tc>, window_params = [{transform_indices = @transform_0, window_bounds = array<i64: 8, 16>}, {pipeline_mode = #tpu.pipeline_mode<synchronous>, transform_indices = @transform_1, window_bounds = array<i64: 16, 32>}, {pipeline_mode = #tpu.pipeline_mode<synchronous>, transform_indices = @transform_2, window_bounds = array<i64: 1, 32>}, {pipeline_mode = #tpu.pipeline_mode<synchronous>, transform_indices = @transform_3, window_bounds = array<i64: 32, 32>}, {pipeline_mode = #tpu.pipeline_mode<synchronous>, transform_indices = @transform_4, window_bounds = array<i64: 1, 32>}, {pipeline_mode = #tpu.pipeline_mode<synchronous>, transform_indices = @transform_5, window_bounds = array<i64: 32, 8>}, {pipeline_mode = #tpu.pipeline_mode<synchronous>, transform_indices = @transform_6, window_bounds = array<i64: 1, 8>}, {transform_indices = @transform_7, window_bounds = array<i64: 8, 4>}]} {
    %c0 = arith.constant 0 : index
    %c0_0 = arith.constant 0 : index
    %0 = vector.load %arg1[%c0, %c0_0] : memref<8x16xf32, #tpu.memory_space<vmem>>, vector<8x16xf32>
    %c0_1 = arith.constant 0 : index
    %c0_2 = arith.constant 0 : index
    %1 = vector.load %arg2[%c0_1, %c0_2] : memref<16x32xf32, #tpu.memory_space<vmem>>, vector<16x32xf32>
    %cst = arith.constant dense<0.000000e+00> : vector<8x32xf32>
    %2 = tpu.matmul %0, %1, %cst {dimension_numbers = #tpu.dot_dimension_numbers<[1], [0], [0], [1], [0, 0, 1, 1], [], []>} : vector<8x16xf32>, vector<16x32xf32>, vector<8x32xf32> -> vector<8x32xf32>
    %c0_3 = arith.constant 0 : index
    %c0_4 = arith.constant 0 : index
    %3 = vector.load %arg3[%c0_3, %c0_4] : memref<1x32xf32, #tpu.memory_space<vmem>>, vector<1x32xf32>
    %4 = vector.broadcast %3 : vector<1x32xf32> to vector<8x32xf32>
    %5 = arith.addf %2, %4 : vector<8x32xf32>
    %cst_5 = arith.constant 0.000000e+00 : f32
    %6 = vector.broadcast %cst_5 : f32 to vector<8x32xf32>
    %7 = arith.maximumf %5, %6 : vector<8x32xf32>
    %c0_6 = arith.constant 0 : index
    %c0_7 = arith.constant 0 : index
    %8 = vector.load %arg4[%c0_6, %c0_7] : memref<32x32xf32, #tpu.memory_space<vmem>>, vector<32x32xf32>
    %cst_8 = arith.constant dense<0.000000e+00> : vector<8x32xf32>
    %9 = tpu.matmul %7, %8, %cst_8 {dimension_numbers = #tpu.dot_dimension_numbers<[1], [0], [0], [1], [0, 0, 1, 1], [], []>} : vector<8x32xf32>, vector<32x32xf32>, vector<8x32xf32> -> vector<8x32xf32>
    %c0_9 = arith.constant 0 : index
    %c0_10 = arith.constant 0 : index
    %10 = vector.load %arg5[%c0_9, %c0_10] : memref<1x32xf32, #tpu.memory_space<vmem>>, vector<1x32xf32>
    %11 = vector.broadcast %10 : vector<1x32xf32> to vector<8x32xf32>
    %12 = arith.addf %9, %11 : vector<8x32xf32>
    %cst_11 = arith.constant 0.000000e+00 : f32
    %13 = vector.broadcast %cst_11 : f32 to vector<8x32xf32>
    %14 = arith.maximumf %12, %13 : vector<8x32xf32>
    %c0_12 = arith.constant 0 : index
    %c0_13 = arith.constant 0 : index
    %15 = vector.load %arg6[%c0_12, %c0_13] : memref<32x8xf32, #tpu.memory_space<vmem>>, vector<32x8xf32>
    %cst_14 = arith.constant dense<0.000000e+00> : vector<8x8xf32>
    %16 = tpu.matmul %14, %15, %cst_14 {dimension_numbers = #tpu.dot_dimension_numbers<[1], [0], [0], [1], [0, 0, 1, 1], [], []>} : vector<8x32xf32>, vector<32x8xf32>, vector<8x8xf32> -> vector<8x8xf32>
    %c0_15 = arith.constant 0 : index
    %c0_16 = arith.constant 0 : index
    %17 = vector.load %arg7[%c0_15, %c0_16] : memref<1x8xf32, #tpu.memory_space<vmem>>, vector<1x8xf32>
    %18 = vector.broadcast %17 : vector<1x8xf32> to vector<8x8xf32>
    %19 = arith.addf %16, %18 : vector<8x8xf32>
    %20 = vector.extract_strided_slice %19 {offsets = [0, 0], sizes = [8, 4], strides = [1, 1]} : vector<8x8xf32> to vector<8x4xf32>
    %21 = vector.extract_strided_slice %19 {offsets = [0, 4], sizes = [8, 1], strides = [1, 1]} : vector<8x8xf32> to vector<8x1xf32>
    %cst_17 = arith.constant dense<0.000000e+00> : vector<8xf32>
    %22 = vector.multi_reduction <add>, %20, %cst_17 [1] : vector<8x4xf32> to vector<8xf32>
    %23 = vector.shape_cast %22 : vector<8xf32> to vector<8x1xf32>
    %cst_18 = arith.constant 2.500000e-01 : f32
    %24 = vector.broadcast %cst_18 : f32 to vector<8x1xf32>
    %25 = arith.mulf %23, %24 : vector<8x1xf32>
    %26 = vector.broadcast %21 : vector<8x1xf32> to vector<8x4xf32>
    %27 = arith.addf %26, %20 : vector<8x4xf32>
    %28 = vector.broadcast %25 : vector<8x1xf32> to vector<8x4xf32>
    %29 = arith.subf %27, %28 : vector<8x4xf32>
    %c0_19 = arith.constant 0 : index
    %c0_20 = arith.constant 0 : index
    %30 = vector.load %arg8[%c0_19, %c0_20] : memref<8x4xf32, #tpu.memory_space<vmem>>, vector<8x4xf32>
    tpu.vector_store %arg8[%c0_19, %c0_20], %29 {strides = array<i32>} : memref<8x4xf32, #tpu.memory_space<vmem>>, vector<8x4xf32>,
    return
  }
  func.func @transform_0(%arg0: i32) -> (i32, i32) {
    %c0_i32 = arith.constant 0 : i32
    %c0_i32_0 = arith.constant 0 : i32
    return %arg0, %c0_i32 : i32, i32
  }
  func.func @transform_1(%arg0: i32) -> (i32, i32) {
    %c0_i32 = arith.constant 0 : i32
    %c0_i32_0 = arith.constant 0 : i32
    %c0_i32_1 = arith.constant 0 : i32
    return %c0_i32, %c0_i32_0 : i32, i32
  }
  func.func @transform_2(%arg0: i32) -> (i32, i32) {
    %c0_i32 = arith.constant 0 : i32
    %c0_i32_0 = arith.constant 0 : i32
    %c0_i32_1 = arith.constant 0 : i32
    return %c0_i32, %c0_i32_0 : i32, i32
  }
  func.func @transform_3(%arg0: i32) -> (i32, i32) {
    %c0_i32 = arith.constant 0 : i32
    %c0_i32_0 = arith.constant 0 : i32
    %c0_i32_1 = arith.constant 0 : i32
    return %c0_i32, %c0_i32_0 : i32, i32
  }
  func.func @transform_4(%arg0: i32) -> (i32, i32) {
    %c0_i32 = arith.constant 0 : i32
    %c0_i32_0 = arith.constant 0 : i32
    %c0_i32_1 = arith.constant 0 : i32
    return %c0_i32, %c0_i32_0 : i32, i32
  }
  func.func @transform_5(%arg0: i32) -> (i32, i32) {
    %c0_i32 = arith.constant 0 : i32
    %c0_i32_0 = arith.constant 0 : i32
    %c0_i32_1 = arith.constant 0 : i32
    return %c0_i32, %c0_i32_0 : i32, i32
  }
  func.func @transform_6(%arg0: i32) -> (i32, i32) {
    %c0_i32 = arith.constant 0 : i32
    %c0_i32_0 = arith.constant 0 : i32
    %c0_i32_1 = arith.constant 0 : i32
    return %c0_i32, %c0_i32_0 : i32, i32
  }
  func.func @transform_7(%arg0: i32) -> (i32, i32) {
    %c0_i32 = arith.constant 0 : i32
    %c0_i32_0 = arith.constant 0 : i32
    return %arg0, %c0_i32 : i32, i32
  }
}

</mosaic_0001>

<bundles_post_ra>
// kernel: tpu_custom_call.1
= control target key start
LH: loop header
LB: loop body
LE: loop exit
PB: predicated region body
PF: predicated region fallthrough
CT: control target
= control target key end

     0   :  { %12 = vsyncpa [#allocation3], 0  ;;  %s404_s24 = smov [#allocation2]   ;;  %s506_s0 = inlined_call_operand.hbm [shape: f32[8,16], index: 0, kind: input, shape index: {}]   ;;  %s507_s1 = inlined_call_operand.vmem [shape: f32[16,32], index: 1, kind: input, shape index: {}]   ;;  %s508_s2 = inlined_call_operand.vmem [shape: f32[1,32], index: 2, kind: input, shape index: {}]   ;;  %s509_s3 = inlined_call_operand.vmem [shape: f32[32,32], index: 3, kind: input, shape index: {}]   ;;  %s510_s4 = inlined_call_operand.vmem [shape: f32[1,32], index: 4, kind: input, shape index: {}]   ;;  %s511_s5 = inlined_call_operand.vmem [shape: f32[32,8], index: 5, kind: input, shape index: {}]   ;;  %s512_s6 = inlined_call_operand.vmem [shape: f32[1,8], index: 6, kind: input, shape index: {}]   ;;  %s513_s7 = inlined_call_operand.vmem [shape: f32[8,4], index: 7, kind: output, shape index: {}]  }
   0x1   :  { %s19_s25 = sshll.u32 %s404_s24, 4  ;;  %s380_s28 = scalar_lea.hbm %s506_s0, 128  ;;  %s20_s25 = int_to_ptr.vmem [resolvable:$true] %s19_s25 }
   0x2   :  { %p381_p0 = scmp.ne.s32.totalorder %s506_s0, %s380_s28  ;;  %p384_p1 = scmp.lt.u32.totalorder %s380_s28, %s506_s0 }
   0x4   :  { %p386_p2 = pnand %p384_p1, %p381_p0 }
   0x6   :  { %389 = shalt.err (!%p386_p2)
}
   0x7   :  { %s390_s10 = scalar_lea.vmem %s20_s25, 128  ;;  %p395_p4 = scmp.lt.s32.totalorder %s20_s25, %s20_s25 }
   0x8   :  { %p391_p3 = scmp.ne.s32.totalorder %s20_s25, %s390_s10  ;;  %p396_p5 = scmp.lt.s32.totalorder %s390_s10, %s390_s10 }
   0xa   :  { %p397_p6 = por %p396_p5, %p395_p4 }
   0xc   :  { %p398_p7 = pnand %p397_p6, %p391_p3 }
   0xe   :  { %401 = shalt.err (!%p398_p7)
}
   0xf   :  { %22 = dma.hbm_to_vmem [thread:$0]  %s506_s0, 128, %s20_s25, [#allocation3]  }
  0x10   :  { %402 = dma.done.wait [#allocation3], 128  }
  0x11   :  { %403 = vsyncadd [#allocation3], 4294967168  ;;  %v405_v0 = vmov 0.0|0.0   ;;  %vm406_vm0 = vmmov 0   ;;  %v407_v1 = vmov 0.0   ;;  %v39_v2 = vld [vmem:[%s507_s1] sm:$0xff] }
  0x12   :  { %359 = vmatprep.subr.bf16.mxu0 %v405_v0  ;;  %334 = vmatprep.mubr.msk.f32.mxu0 %vm406_vm0, %v407_v1  ;;  %v40_v3 = vld [vmem:[%s507_s1 + $0x8] sm:$0xff]  ;;  %v123_v5 = vld [vmem:[%s509_s3] sm:$0xff]  ;;  %vm48_vm1 = vcmask 130048   ;;  %v125_v9 = vld [vmem:[%s509_s3 + $0x10] sm:$0xff]  ;;  %vm134_vm2 = vcmask 261120   ;;  %v408_v28 = vmov 4  }
  0x13   :  { %362 = vmatprep.subr.bf16.mxu1 %v405_v0  ;;  %345 = vmatprep.mubr.msk.f32.mxu1 %vm406_vm0, %v407_v1  ;;  %v360_v4 = vpack.c.bf16 %v40_v3, %v39_v2  ;;  %v124_v6 = vld [vmem:[%s509_s3 + $0x8] sm:$0xff]  ;;  %v38_v8 = vld [vmem:[#allocation2] sm:$0xff]  ;;  %v126_v10 = vld [vmem:[%s509_s3 + $0x18] sm:$0xff]  ;;  %vm293_vm3 = vcmask 31744  }
  0x14   :  { %v363_v7 = vpack.c.bf16 %v124_v6, %v123_v5  ;;  %v366_v11 = vpack.c.bf16 %v126_v10, %v125_v9  ;;  %v209_v12 = vld [vmem:[%s511_s5] sm:$0xff]  ;;  %v210_v13 = vld [vmem:[%s511_s5 + $0x8] sm:$0xff]  ;;  %v211_v20 = vld [vmem:[%s511_s5 + $0x10] sm:$0xff]  ;;  %379 = vset.pattern.permute.xlu0 %v408_v28 }
  0x15   :  { %361 = vmatpush3.bf16.msra.mxu0 %v360_v4  ;;  %v369_v14 = vpack.c.bf16 %v210_v13, %v209_v12  ;;  %v311_v15 = vld [vmem:[%s508_s2] ss:$0 sm:$0xff]  ;;  %v212_v21 = vld [vmem:[%s511_s5 + $0x18] sm:$0xff] }
  0x16   :  { %364 = vmatpush3.bf16.msra.mxu1 %v363_v7  ;;  %368 = vmatprep.subr.bf16.mxu0 %v405_v0  ;;  %v372_v22 = vpack.c.bf16 %v212_v21, %v211_v20  ;;  %v313_v23 = vld [vmem:[%s510_s4] ss:$0 sm:$0xff] }
  0x17   :  { %365 = vmatprep.subr.bf16.mxu1 %v405_v0  ;;  %v315_v29 = vld [vmem:[%s512_s6] ss:$0 sm:$0xff] }
  0x18   :  { %335 = vmatmul.mubr.msk.f32.vlgmr.msra.gmra.mrb[0].mxu0 %vm48_vm1, %v38_v8 }
  0x19   :  { %356 = vmatprep.mubr.msk.f32.mxu0 %vm406_vm0, %v407_v1  ;;  %370 = vmatpush3.bf16.msra.mxu0 %v369_v14 }
  0x1a   :  { %367 = vmatpush3.bf16.msra.mxu1 %v366_v11  ;;  %371 = vmatprep.subr.bf16.mxu0 %v405_v0 }
  0x1d   :  { %373 = vmatpush3.bf16.msra.mxu0 %v372_v22 }
  0xeb   :  { %v118_v16 = vpop.f32.mrb[0].mxu0 }
  0xec   :  { %v119_v17 = vadd.f32 %v311_v15, %v118_v16  ;;  %v336_v18 = vpop.f32.mrb[1].mxu0 }
  0xee   :  { %v122_v19 = vmax.f32 %v119_v17, 0.0 }
  0xf0   :  { %346 = vmatmul.mubr.msk.f32.vlgmr.msra.gmra.mrb[0].mxu1 %vm134_vm2, %v122_v19 }
 0x1c3   :  { %v204_v24 = vpop.f32.mrb[0].mxu1 }
 0x1c4   :  { %v205_v25 = vadd.f32 %v313_v23, %v204_v24  ;;  %v347_v26 = vpop.f32.mrb[1].mxu1 }
 0x1c6   :  { %v208_v27 = vmax.f32 %v205_v25, 0.0 }
 0x1c8   :  { %357 = vmatmul.mubr.msk.f32.vlgmr.msra.gmra.mrb[2].mxu0 %vm134_vm2, %v208_v27 }
 0x29b   :  { %v289_v30 = vpop.f32.mrb[2].mxu0 }
 0x29c   :  { %v290_v31 = vadd.f32 %v315_v29, %v289_v30  ;;  %v358_v32 = vpop.f32.mrb[3].mxu0 }
 0x29e   :  { %v294_v33 = vsel %vm293_vm3, %v290_v31, 0.0 }
 0x29f   :  { %295 = vadd.xlane.f32.xlu0 %v294_v33 }
 0x2b5   :  { %300 = vperm.xlu0 %379, %v290_v31  }
 0x32c   :  { %v296_v34 = vpop.xlane.xlu0 %295 }
 0x32d   :  { %v297_v36 = vmul.f32 0.25, %v296_v34 }
 0x334   :  { %v301_v35 = vpop.permute.xlu0 %300 }
 0x335   :  { %v303_v37 = vadd.f32 %v301_v35, %v290_v31 }
 0x337   :  { %v304_v38 = vsub.f32 %v303_v37, %v297_v36 }
 0x339   :  { %305 = vst.msk [vmem:[%s513_s7] sm:$0xff] %vm293_vm3, %v304_v38 }
 0x33a   :  { %310 = vsyncpa [#allocation3], 1 }

</bundles_post_ra>
